<compile_context>
chip_gen: v6e
topology: v6e:2x2x1
jax: 0.10.0
libtpu: 0.0.40
codegen_flags: <defaults>
</compile_context>

<pallas_src>
import math
import functools

import jax
import jax.numpy as jnp
from jax.experimental import pallas as pl
from jax.experimental.pallas import tpu as pltpu


def _layernorm(x, gamma, beta, eps=1e-5):
    # x: (TQ, D); gamma/beta: (1, D).  Biased variance, like torch LayerNorm.
    mean = jnp.mean(x, axis=-1, keepdims=True)
    var = jnp.mean((x - mean) ** 2, axis=-1, keepdims=True)
    inv = jax.lax.rsqrt(var + eps)
    return (x - mean) * inv * gamma + beta


def _encoder_layer_kernel(
    xq_ref, xf_ref,
    wq_ref, bq_ref, wk_ref, bk_ref, wv_ref, bv_ref, wo_ref, bo_ref,
    w1_ref, b1_ref, w2_ref, b2_ref,
    ln1_w_ref, ln1_b_ref, ln2_w_ref, ln2_b_ref,
    out_ref, attn_ref,
    acc_ref,
    *, scale,
):
    h = pl.program_id(2)
    last_h = pl.num_programs(2) - 1

    x_q = xq_ref[0]   # (TQ, D)  query tile (also the residual source)
    x_f = xf_ref[0]   # (S,  D)  full sequence (for K / V)

    @pl.when(h == 0)
    def _init():
        acc_ref[...] = jnp.zeros_like(acc_ref)

    # --- per-head Q/K/V projections (MXU), lane-dense weight blocks ---
    q_h = jnp.dot(x_q, wq_ref[0], preferred_element_type=jnp.float32) + bq_ref[0]  # (TQ, hd)
    k_h = jnp.dot(x_f, wk_ref[0], preferred_element_type=jnp.float32) + bk_ref[0]  # (S,  hd)
    v_h = jnp.dot(x_f, wv_ref[0], preferred_element_type=jnp.float32) + bv_ref[0]  # (S,  hd)

    # scores = q_h @ k_h.T  (contract head_dim), scaled
    scores = jax.lax.dot_general(
        q_h, k_h, (((1,), (1,)), ((), ())),
        preferred_element_type=jnp.float32) * scale                               # (TQ, S)

    # --- softmax (f32, exact reciprocal to match torch within 1e-5) ---
    m = jnp.max(scores, axis=-1, keepdims=True)
    e = jnp.exp(scores - m)
    denom = jnp.sum(e, axis=-1, keepdims=True)
    attn = e * pl.reciprocal(denom, approx=False)                                  # (TQ, S)
    # TODO(synk): attention-dropout / dropout1 / dropout2 are identity (eval mode).

    attn_ref[0, 0] = attn  # lane-dense (TQ, S) write, one head per grid step

    # --- context + per-head slice of the output projection, accumulated ---
    ctx_h = jnp.dot(attn, v_h, preferred_element_type=jnp.float32)                 # (TQ, hd)
    acc_ref[...] += jnp.dot(ctx_h, wo_ref[0], preferred_element_type=jnp.float32)  # (TQ, D)

    # --- finalize once per (batch, q-tile): residual/LN1 + FFN + residual/LN2 ---
    @pl.when(h == last_h)
    def _finalize():
        attn_out = acc_ref[...] + bo_ref[...]
        x1 = _layernorm(x_q + attn_out, ln1_w_ref[...], ln1_b_ref[...])
        h1 = jnp.dot(x1, w1_ref[...], preferred_element_type=jnp.float32) + b1_ref[...]
        h1 = jnp.maximum(h1, 0.0)  # ReLU
        ff = jnp.dot(h1, w2_ref[...], preferred_element_type=jnp.float32) + b2_ref[...]
        out_ref[0] = _layernorm(x1 + ff, ln2_w_ref[...], ln2_b_ref[...]).astype(out_ref.dtype)


def transformer_encoder_layer(x, params, num_heads, block_q=256):
    """x: (B, S, D) float32.  params: dict of weights in (in, out) layout."""
    B, S, D = x.shape
    F = params["w1"].shape[1]
    H = num_heads
    hd = D // H
    scale = 1.0 / math.sqrt(hd)

    # Query-tile size: TQ divides S; fall back to the full sequence if not.
    TQ = block_q if (block_q < S and S % block_q == 0) else S
    n_q = S // TQ

    # Reshape projection weights/biases into per-head, lane-dense slabs.
    wq_r = params["wq"].reshape(D, H, hd).transpose(1, 0, 2)   # (H, D, hd)
    wk_r = params["wk"].reshape(D, H, hd).transpose(1, 0, 2)   # (H, D, hd)
    wv_r = params["wv"].reshape(D, H, hd).transpose(1, 0, 2)   # (H, D, hd)
    wo_r = params["wo"].reshape(H, hd, D)                      # (H, hd, D)
    bq_r = params["bq"].reshape(H, hd)[:, None, :]             # (H, 1, hd)
    bk_r = params["bk"].reshape(H, hd)[:, None, :]
    bv_r = params["bv"].reshape(H, hd)[:, None, :]

    head_w = lambda: pl.BlockSpec((1, D, hd), lambda b, q, h: (h, 0, 0))
    head_b = lambda: pl.BlockSpec((1, 1, hd), lambda b, q, h: (h, 0, 0))
    full2d = lambda shape: pl.BlockSpec(shape, lambda b, q, h: (0, 0))

    in_specs = [
        pl.BlockSpec((1, TQ, D), lambda b, q, h: (b, q, 0)),   # x (query tile / residual)
        pl.BlockSpec((1, S, D), lambda b, q, h: (b, 0, 0)),    # x (full sequence for K/V)
        head_w(), head_b(),                                    # Wq[h], bq[h]
        head_w(), head_b(),                                    # Wk[h], bk[h]
        head_w(), head_b(),                                    # Wv[h], bv[h]
        pl.BlockSpec((1, hd, D), lambda b, q, h: (h, 0, 0)),   # Wo[h]
        full2d((1, D)),                                        # bo
        full2d((D, F)), full2d((1, F)),                        # W1, b1
        full2d((F, D)), full2d((1, D)),                        # W2, b2
        full2d((1, D)), full2d((1, D)),                        # ln1 gamma, beta
        full2d((1, D)), full2d((1, D)),                        # ln2 gamma, beta
    ]
    out_specs = [
        pl.BlockSpec((1, TQ, D), lambda b, q, h: (b, q, 0)),        # layer output
        pl.BlockSpec((1, 1, TQ, S), lambda b, q, h: (b, h, q, 0)),  # attn weights
    ]
    out_shape = [
        jax.ShapeDtypeStruct((B, S, D), jnp.float32),
        jax.ShapeDtypeStruct((B, H, S, S), jnp.float32),
    ]

    # Rough resident-VMEM footprint (f32), used to size the scoped-VMEM limit.
    vmem_bytes = 4 * (
        2 * (TQ * D + S * D)                   # double-buffered x tiles
        + 2 * (3 * (D * hd + hd) + hd * D)     # double-buffered per-head weights
        + (D * F + F * D + 2 * F + 8 * D)      # resident FFN / bias / LN params
        + 2 * (TQ * D + TQ * S)                # double-buffered output blocks
        + TQ * D                               # accumulator scratch
        + 3 * TQ * S + 3 * S * hd + TQ * F     # in-kernel intermediates (headroom)
    )
    vmem_limit = int(min(max(2 * vmem_bytes, 32 * 1024 * 1024), 64 * 1024 * 1024))

    cost = pl.CostEstimate(
        flops=int(B * (8 * S * D * D + 4 * S * S * D + 4 * S * D * F)),
        transcendentals=int(B * H * S * S),
        bytes_accessed=int(4 * (B * S * D * (1 + n_q) + 4 * D * D + 2 * D * F
                                + B * S * D + B * H * S * S)),
    )

    kernel = functools.partial(_encoder_layer_kernel, scale=scale)

    fn = pl.pallas_call(
        kernel,
        out_shape=out_shape,
        grid_spec=pltpu.PrefetchScalarGridSpec(
            num_scalar_prefetch=0,
            grid=(B, n_q, H),
            in_specs=in_specs,
            out_specs=out_specs,
            scratch_shapes=[pltpu.VMEM((TQ, D), jnp.float32)],
        ),
        compiler_params=pltpu.CompilerParams(
            dimension_semantics=("parallel", "parallel", "arbitrary"),
            vmem_limit_bytes=vmem_limit,
        ),
        cost_estimate=cost,
    )

    return fn(
        x, x,
        wq_r, bq_r,
        wk_r, bk_r,
        wv_r, bv_r,
        wo_r, params["bo"],
        params["w1"], params["b1"],
        params["w2"], params["b2"],
        params["ln1_w"], params["ln1_b"],
        params["ln2_w"], params["ln2_b"],
    )


def init_params(key, d_model, num_heads, dim_feedforward):
    ks = jax.random.split(key, 12)
    s = 0.02
    return {
        "wq": jax.random.normal(ks[0], (d_model, d_model), jnp.float32) * s,
        "bq": jax.random.normal(ks[1], (1, d_model), jnp.float32) * s,
        "wk": jax.random.normal(ks[2], (d_model, d_model), jnp.float32) * s,
        "bk": jax.random.normal(ks[3], (1, d_model), jnp.float32) * s,
        "wv": jax.random.normal(ks[4], (d_model, d_model), jnp.float32) * s,
        "bv": jax.random.normal(ks[5], (1, d_model), jnp.float32) * s,
        "wo": jax.random.normal(ks[6], (d_model, d_model), jnp.float32) * s,
        "bo": jax.random.normal(ks[7], (1, d_model), jnp.float32) * s,
        "w1": jax.random.normal(ks[8], (d_model, dim_feedforward), jnp.float32) * s,
        "b1": jax.random.normal(ks[9], (1, dim_feedforward), jnp.float32) * s,
        "w2": jax.random.normal(ks[10], (dim_feedforward, d_model), jnp.float32) * s,
        "b2": jax.random.normal(ks[11], (1, d_model), jnp.float32) * s,
        "ln1_w": jnp.ones((1, d_model), jnp.float32),
        "ln1_b": jnp.zeros((1, d_model), jnp.float32),
        "ln2_w": jnp.ones((1, d_model), jnp.float32),
        "ln2_b": jnp.zeros((1, d_model), jnp.float32),
    }


def _reference(x, p, num_heads):
    """Pure-JAX reference mirroring the PyTorch forward (eval mode)."""
    B, S, D = x.shape
    hd = D // num_heads

    def ln(y, g, b, eps=1e-5):
        m = jnp.mean(y, -1, keepdims=True)
        v = jnp.mean((y - m) ** 2, -1, keepdims=True)
        return (y - m) / jnp.sqrt(v + eps) * g + b

    q = (x @ p["wq"] + p["bq"]).reshape(B, S, num_heads, hd).transpose(0, 2, 1, 3)
    k = (x @ p["wk"] + p["bk"]).reshape(B, S, num_heads, hd).transpose(0, 2, 1, 3)
    v = (x @ p["wv"] + p["bv"]).reshape(B, S, num_heads, hd).transpose(0, 2, 1, 3)
    scores = jnp.einsum("bhqd,bhkd->bhqk", q, k) / math.sqrt(hd)
    attn = jax.nn.softmax(scores, axis=-1)
    ctx = jnp.einsum("bhqk,bhkd->bhqd", attn, v).transpose(0, 2, 1, 3).reshape(B, S, D)
    attn_out = ctx @ p["wo"] + p["bo"]
    x1 = ln(x + attn_out, p["ln1_w"], p["ln1_b"])
    ff = jnp.maximum(x1 @ p["w1"] + p["b1"], 0.0) @ p["w2"] + p["b2"]
    x2 = ln(x1 + ff, p["ln2_w"], p["ln2_b"])
    return x2, attn


if __name__ == "__main__":
    B, S, D, H, F = 2, 8, 32, 4, 64
    key = jax.random.PRNGKey(0)
    kx, kp = jax.random.split(key)
    x = jax.random.normal(kx, (B, S, D), jnp.float32)
    params = init_params(kp, D, H, F)

    out, attn_w = transformer_encoder_layer(x, params, H)
    out = jax.block_until_ready(out)
    attn_w = jax.block_until_ready(attn_w)

    ref_out, ref_attn = _reference(x, params, H)
    assert jnp.allclose(out, ref_out, atol=1e-4, rtol=1e-4), "output mismatch"
    assert jnp.allclose(attn_w, ref_attn, atol=1e-5, rtol=1e-5), "attn mismatch"

    print("KERNEL_OK")
</pallas_src>

<mosaic_0001>
module attributes {stable_mosaic.version = 11 : i64} {
  func.func @_encoder_layer_kernel(%arg0: i32, %arg1: i32, %arg2: i32, %arg3: memref<1x8x32xf32, #tpu.memory_space<vmem>>, %arg4: memref<1x8x32xf32, #tpu.memory_space<vmem>>, %arg5: memref<1x32x8xf32, #tpu.memory_space<vmem>>, %arg6: memref<1x1x8xf32, #tpu.memory_space<vmem>>, %arg7: memref<1x32x8xf32, #tpu.memory_space<vmem>>, %arg8: memref<1x1x8xf32, #tpu.memory_space<vmem>>, %arg9: memref<1x32x8xf32, #tpu.memory_space<vmem>>, %arg10: memref<1x1x8xf32, #tpu.memory_space<vmem>>, %arg11: memref<1x8x32xf32, #tpu.memory_space<vmem>>, %arg12: memref<1x32xf32, #tpu.memory_space<vmem>>, %arg13: memref<32x64xf32, #tpu.memory_space<vmem>>, %arg14: memref<1x64xf32, #tpu.memory_space<vmem>>, %arg15: memref<64x32xf32, #tpu.memory_space<vmem>>, %arg16: memref<1x32xf32, #tpu.memory_space<vmem>>, %arg17: memref<1x32xf32, #tpu.memory_space<vmem>>, %arg18: memref<1x32xf32, #tpu.memory_space<vmem>>, %arg19: memref<1x32xf32, #tpu.memory_space<vmem>>, %arg20: memref<1x32xf32, #tpu.memory_space<vmem>>, %arg21: memref<1x8x32xf32, #tpu.memory_space<vmem>>, %arg22: memref<1x1x8x8xf32, #tpu.memory_space<vmem>>, %arg23: memref<8x32xf32, #tpu.memory_space<vmem>>) attributes {dimension_semantics = [#tpu.dimension_semantics<parallel>, #tpu.dimension_semantics<parallel>, #tpu.dimension_semantics<arbitrary>], iteration_bounds = array<i64: 2, 1, 4>, scalar_prefetch = 0 : i64, scratch_operands = 1 : i64, tpu.core_type = #tpu.core_type<tc>, window_params = [{transform_indices = @transform_0, window_bounds = array<i64: 1, 8, 32>}, {transform_indices = @transform_1, window_bounds = array<i64: 1, 8, 32>}, {transform_indices = @transform_2, window_bounds = array<i64: 1, 32, 8>}, {transform_indices = @transform_3, window_bounds = array<i64: 1, 1, 8>}, {transform_indices = @transform_4, window_bounds = array<i64: 1, 32, 8>}, {transform_indices = @transform_5, window_bounds = array<i64: 1, 1, 8>}, {transform_indices = @transform_6, window_bounds = array<i64: 1, 32, 8>}, {transform_indices = @transform_7, window_bounds = array<i64: 1, 1, 8>}, {transform_indices = @transform_8, window_bounds = array<i64: 1, 8, 32>}, {pipeline_mode = #tpu.pipeline_mode<synchronous>, transform_indices = @transform_9, window_bounds = array<i64: 1, 32>}, {pipeline_mode = #tpu.pipeline_mode<synchronous>, transform_indices = @transform_10, window_bounds = array<i64: 32, 64>}, {pipeline_mode = #tpu.pipeline_mode<synchronous>, transform_indices = @transform_11, window_bounds = array<i64: 1, 64>}, {pipeline_mode = #tpu.pipeline_mode<synchronous>, transform_indices = @transform_12, window_bounds = array<i64: 64, 32>}, {pipeline_mode = #tpu.pipeline_mode<synchronous>, transform_indices = @transform_13, window_bounds = array<i64: 1, 32>}, {pipeline_mode = #tpu.pipeline_mode<synchronous>, transform_indices = @transform_14, window_bounds = array<i64: 1, 32>}, {pipeline_mode = #tpu.pipeline_mode<synchronous>, transform_indices = @transform_15, window_bounds = array<i64: 1, 32>}, {pipeline_mode = #tpu.pipeline_mode<synchronous>, transform_indices = @transform_16, window_bounds = array<i64: 1, 32>}, {pipeline_mode = #tpu.pipeline_mode<synchronous>, transform_indices = @transform_17, window_bounds = array<i64: 1, 32>}, {transform_indices = @transform_18, window_bounds = array<i64: 1, 8, 32>}, {transform_indices = @transform_19, window_bounds = array<i64: 1, 1, 8, 8>}]} {
    %c0 = arith.constant 0 : index
    %c0_0 = arith.constant 0 : index
    %c0_1 = arith.constant 0 : index
    %0 = vector.load %arg3[%c0, %c0_0, %c0_1] : memref<1x8x32xf32, #tpu.memory_space<vmem>>, vector<1x8x32xf32>
    %1 = vector.shape_cast %0 : vector<1x8x32xf32> to vector<8x32xf32>
    %c0_2 = arith.constant 0 : index
    %c0_3 = arith.constant 0 : index
    %c0_4 = arith.constant 0 : index
    %2 = vector.load %arg4[%c0_2, %c0_3, %c0_4] : memref<1x8x32xf32, #tpu.memory_space<vmem>>, vector<1x8x32xf32>
    %3 = vector.shape_cast %2 : vector<1x8x32xf32> to vector<8x32xf32>
    %c0_i32 = arith.constant 0 : i32
    %4 = arith.cmpi eq, %arg2, %c0_i32 : i32
    %5 = arith.extui %4 : i1 to i32
    %c0_i32_5 = arith.constant 0 : i32
    %6 = arith.cmpi ne, %5, %c0_i32_5 : i32
    scf.if %6 {
      %cst_44 = arith.constant 0.000000e+00 : f32
      %54 = vector.broadcast %cst_44 : f32 to vector<8x32xf32>
      %c0_45 = arith.constant 0 : index
      %c0_46 = arith.constant 0 : index
      %55 = vector.load %arg23[%c0_45, %c0_46] : memref<8x32xf32, #tpu.memory_space<vmem>>, vector<8x32xf32>
      tpu.vector_store %arg23[%c0_45, %c0_46], %54 {strides = array<i32>} : memref<8x32xf32, #tpu.memory_space<vmem>>, vector<8x32xf32>,
    } else {
    }
    %c0_6 = arith.constant 0 : index
    %c0_7 = arith.constant 0 : index
    %c0_8 = arith.constant 0 : index
    %7 = vector.load %arg5[%c0_6, %c0_7, %c0_8] : memref<1x32x8xf32, #tpu.memory_space<vmem>>, vector<1x32x8xf32>
    %8 = vector.shape_cast %7 : vector<1x32x8xf32> to vector<32x8xf32>
    %cst = arith.constant dense<0.000000e+00> : vector<8x8xf32>
    %9 = tpu.matmul %1, %8, %cst {dimension_numbers = #tpu.dot_dimension_numbers<[1], [0], [0], [1], [0, 0, 1, 1], [], []>} : vector<8x32xf32>, vector<32x8xf32>, vector<8x8xf32> -> vector<8x8xf32>
    %c0_9 = arith.constant 0 : index
    %c0_10 = arith.constant 0 : index
    %c0_11 = arith.constant 0 : index
    %10 = vector.load %arg6[%c0_9, %c0_10, %c0_11] : memref<1x1x8xf32, #tpu.memory_space<vmem>>, vector<1x1x8xf32>
    %11 = vector.shape_cast %10 : vector<1x1x8xf32> to vector<1x8xf32>
    %12 = vector.broadcast %11 : vector<1x8xf32> to vector<8x8xf32>
    %13 = arith.addf %9, %12 : vector<8x8xf32>
    %c0_12 = arith.constant 0 : index
    %c0_13 = arith.constant 0 : index
    %c0_14 = arith.constant 0 : index
    %14 = vector.load %arg7[%c0_12, %c0_13, %c0_14] : memref<1x32x8xf32, #tpu.memory_space<vmem>>, vector<1x32x8xf32>
    %15 = vector.shape_cast %14 : vector<1x32x8xf32> to vector<32x8xf32>
    %cst_15 = arith.constant dense<0.000000e+00> : vector<8x8xf32>
    %16 = tpu.matmul %3, %15, %cst_15 {dimension_numbers = #tpu.dot_dimension_numbers<[1], [0], [0], [1], [0, 0, 1, 1], [], []>} : vector<8x32xf32>, vector<32x8xf32>, vector<8x8xf32> -> vector<8x8xf32>
    %c0_16 = arith.constant 0 : index
    %c0_17 = arith.constant 0 : index
    %c0_18 = arith.constant 0 : index
    %17 = vector.load %arg8[%c0_16, %c0_17, %c0_18] : memref<1x1x8xf32, #tpu.memory_space<vmem>>, vector<1x1x8xf32>
    %18 = vector.shape_cast %17 : vector<1x1x8xf32> to vector<1x8xf32>
    %19 = vector.broadcast %18 : vector<1x8xf32> to vector<8x8xf32>
    %20 = arith.addf %16, %19 : vector<8x8xf32>
    %c0_19 = arith.constant 0 : index
    %c0_20 = arith.constant 0 : index
    %c0_21 = arith.constant 0 : index
    %21 = vector.load %arg9[%c0_19, %c0_20, %c0_21] : memref<1x32x8xf32, #tpu.memory_space<vmem>>, vector<1x32x8xf32>
    %22 = vector.shape_cast %21 : vector<1x32x8xf32> to vector<32x8xf32>
    %cst_22 = arith.constant dense<0.000000e+00> : vector<8x8xf32>
    %23 = tpu.matmul %3, %22, %cst_22 {dimension_numbers = #tpu.dot_dimension_numbers<[1], [0], [0], [1], [0, 0, 1, 1], [], []>} : vector<8x32xf32>, vector<32x8xf32>, vector<8x8xf32> -> vector<8x8xf32>
    %c0_23 = arith.constant 0 : index
    %c0_24 = arith.constant 0 : index
    %c0_25 = arith.constant 0 : index
    %24 = vector.load %arg10[%c0_23, %c0_24, %c0_25] : memref<1x1x8xf32, #tpu.memory_space<vmem>>, vector<1x1x8xf32>
    %25 = vector.shape_cast %24 : vector<1x1x8xf32> to vector<1x8xf32>
    %26 = vector.broadcast %25 : vector<1x8xf32> to vector<8x8xf32>
    %27 = arith.addf %23, %26 : vector<8x8xf32>
    %cst_26 = arith.constant dense<0.000000e+00> : vector<8x8xf32>
    %28 = tpu.matmul %13, %20, %cst_26 {dimension_numbers = #tpu.dot_dimension_numbers<[1], [1], [0], [0], [0, 0, 1, 0], [], []>} : vector<8x8xf32>, vector<8x8xf32>, vector<8x8xf32> -> vector<8x8xf32>
    %cst_27 = arith.constant 0.353553385 : f32
    %29 = vector.broadcast %cst_27 : f32 to vector<8x8xf32>
    %30 = arith.mulf %28, %29 : vector<8x8xf32>
    %cst_28 = arith.constant dense<0xFF800000> : vector<8xf32>
    %31 = vector.multi_reduction <maximumf>, %30, %cst_28 [1] : vector<8x8xf32> to vector<8xf32>
    %32 = vector.shape_cast %31 : vector<8xf32> to vector<8x1xf32>
    %33 = vector.broadcast %32 : vector<8x1xf32> to vector<8x8xf32>
    %34 = arith.subf %30, %33 : vector<8x8xf32>
    %35 = math.exp %34 : vector<8x8xf32>
    %cst_29 = arith.constant dense<0.000000e+00> : vector<8xf32>
    %36 = vector.multi_reduction <add>, %35, %cst_29 [1] : vector<8x8xf32> to vector<8xf32>
    %37 = vector.shape_cast %36 : vector<8xf32> to vector<8x1xf32>
    %38 = tpu.reciprocal %37 : vector<8x1xf32> -> vector<8x1xf32>
    %39 = vector.broadcast %38 : vector<8x1xf32> to vector<8x8xf32>
    %40 = arith.mulf %35, %39 : vector<8x8xf32>
    %c0_30 = arith.constant 0 : index
    %c0_31 = arith.constant 0 : index
    %c0_32 = arith.constant 0 : index
    %c0_33 = arith.constant 0 : index
    %41 = vector.load %arg22[%c0_30, %c0_31, %c0_32, %c0_33] : memref<1x1x8x8xf32, #tpu.memory_space<vmem>>, vector<1x1x8x8xf32>
    %42 = vector.shape_cast %41 : vector<1x1x8x8xf32> to vector<8x8xf32>
    %43 = vector.shape_cast %40 : vector<8x8xf32> to vector<1x1x8x8xf32>
    tpu.vector_store %arg22[%c0_30, %c0_31, %c0_32, %c0_33], %43 {strides = array<i32>} : memref<1x1x8x8xf32, #tpu.memory_space<vmem>>, vector<1x1x8x8xf32>,
    %cst_34 = arith.constant dense<0.000000e+00> : vector<8x8xf32>
    %44 = tpu.matmul %40, %27, %cst_34 {dimension_numbers = #tpu.dot_dimension_numbers<[1], [0], [0], [1], [0, 0, 1, 1], [], []>} : vector<8x8xf32>, vector<8x8xf32>, vector<8x8xf32> -> vector<8x8xf32>
    %c0_35 = arith.constant 0 : index
    %c0_36 = arith.constant 0 : index
    %45 = vector.load %arg23[%c0_35, %c0_36] : memref<8x32xf32, #tpu.memory_space<vmem>>, vector<8x32xf32>
    %c0_37 = arith.constant 0 : index
    %c0_38 = arith.constant 0 : index
    %c0_39 = arith.constant 0 : index
    %46 = vector.load %arg11[%c0_37, %c0_38, %c0_39] : memref<1x8x32xf32, #tpu.memory_space<vmem>>, vector<1x8x32xf32>
    %47 = vector.shape_cast %46 : vector<1x8x32xf32> to vector<8x32xf32>
    %cst_40 = arith.constant dense<0.000000e+00> : vector<8x32xf32>
    %48 = tpu.matmul %44, %47, %cst_40 {dimension_numbers = #tpu.dot_dimension_numbers<[1], [0], [0], [1], [0, 0, 1, 1], [], []>} : vector<8x8xf32>, vector<8x32xf32>, vector<8x32xf32> -> vector<8x32xf32>
    %49 = arith.addf %45, %48 : vector<8x32xf32>
    %c0_41 = arith.constant 0 : index
    %c0_42 = arith.constant 0 : index
    %50 = vector.load %arg23[%c0_41, %c0_42] : memref<8x32xf32, #tpu.memory_space<vmem>>, vector<8x32xf32>
    tpu.vector_store %arg23[%c0_41, %c0_42], %49 {strides = array<i32>} : memref<8x32xf32, #tpu.memory_space<vmem>>, vector<8x32xf32>,
    %c3_i32 = arith.constant 3 : i32
    %51 = arith.cmpi eq, %arg2, %c3_i32 : i32
    %52 = arith.extui %51 : i1 to i32
    %c0_i32_43 = arith.constant 0 : i32
    %53 = arith.cmpi ne, %52, %c0_i32_43 : i32
    scf.if %53 {
      %c0_44 = arith.constant 0 : index
      %c0_45 = arith.constant 0 : index
      %54 = vector.load %arg23[%c0_44, %c0_45] : memref<8x32xf32, #tpu.memory_space<vmem>>, vector<8x32xf32>
      %c0_46 = arith.constant 0 : index
      %c0_47 = arith.constant 0 : index
      %55 = vector.load %arg12[%c0_46, %c0_47] : memref<1x32xf32, #tpu.memory_space<vmem>>, vector<1x32xf32>
      %56 = vector.broadcast %55 : vector<1x32xf32> to vector<8x32xf32>
      %57 = arith.addf %54, %56 : vector<8x32xf32>
      %58 = arith.addf %1, %57 : vector<8x32xf32>
      %c0_48 = arith.constant 0 : index
      %c0_49 = arith.constant 0 : index
      %59 = vector.load %arg17[%c0_48, %c0_49] : memref<1x32xf32, #tpu.memory_space<vmem>>, vector<1x32xf32>
      %c0_50 = arith.constant 0 : index
      %c0_51 = arith.constant 0 : index
      %60 = vector.load %arg18[%c0_50, %c0_51] : memref<1x32xf32, #tpu.memory_space<vmem>>, vector<1x32xf32>
      %cst_52 = arith.constant dense<0.000000e+00> : vector<8xf32>
      %61 = vector.multi_reduction <add>, %58, %cst_52 [1] : vector<8x32xf32> to vector<8xf32>
      %62 = vector.shape_cast %61 : vector<8xf32> to vector<8x1xf32>
      %cst_53 = arith.constant 3.200000e+01 : f32
      %63 = vector.broadcast %cst_53 : f32 to vector<8x1xf32>
      %64 = arith.divf %62, %63 : vector<8x1xf32>
      %65 = vector.broadcast %64 : vector<8x1xf32> to vector<8x32xf32>
      %66 = arith.subf %58, %65 : vector<8x32xf32>
      %67 = arith.mulf %66, %66 : vector<8x32xf32>
      %cst_54 = arith.constant dense<0.000000e+00> : vector<8xf32>
      %68 = vector.multi_reduction <add>, %67, %cst_54 [1] : vector<8x32xf32> to vector<8xf32>
      %69 = vector.shape_cast %68 : vector<8xf32> to vector<8x1xf32>
      %cst_55 = arith.constant 3.200000e+01 : f32
      %70 = vector.broadcast %cst_55 : f32 to vector<8x1xf32>
      %71 = arith.divf %69, %70 : vector<8x1xf32>
      %cst_56 = arith.constant 9.99999974E-6 : f32
      %72 = vector.broadcast %cst_56 : f32 to vector<8x1xf32>
      %73 = arith.addf %71, %72 : vector<8x1xf32>
      %74 = math.rsqrt %73 : vector<8x1xf32>
      %75 = vector.broadcast %64 : vector<8x1xf32> to vector<8x32xf32>
      %76 = arith.subf %58, %75 : vector<8x32xf32>
      %77 = vector.broadcast %74 : vector<8x1xf32> to vector<8x32xf32>
      %78 = arith.mulf %76, %77 : vector<8x32xf32>
      %79 = vector.broadcast %59 : vector<1x32xf32> to vector<8x32xf32>
      %80 = arith.mulf %78, %79 : vector<8x32xf32>
      %81 = vector.broadcast %60 : vector<1x32xf32> to vector<8x32xf32>
      %82 = arith.addf %80, %81 : vector<8x32xf32>
      %c0_57 = arith.constant 0 : index
      %c0_58 = arith.constant 0 : index
      %83 = vector.load %arg13[%c0_57, %c0_58] : memref<32x64xf32, #tpu.memory_space<vmem>>, vector<32x64xf32>
      %cst_59 = arith.constant dense<0.000000e+00> : vector<8x64xf32>
      %84 = tpu.matmul %82, %83, %cst_59 {dimension_numbers = #tpu.dot_dimension_numbers<[1], [0], [0], [1], [0, 0, 1, 1], [], []>} : vector<8x32xf32>, vector<32x64xf32>, vector<8x64xf32> -> vector<8x64xf32>
      %c0_60 = arith.constant 0 : index
      %c0_61 = arith.constant 0 : index
      %85 = vector.load %arg14[%c0_60, %c0_61] : memref<1x64xf32, #tpu.memory_space<vmem>>, vector<1x64xf32>
      %86 = vector.broadcast %85 : vector<1x64xf32> to vector<8x64xf32>
      %87 = arith.addf %84, %86 : vector<8x64xf32>
      %cst_62 = arith.constant 0.000000e+00 : f32
      %88 = vector.broadcast %cst_62 : f32 to vector<8x64xf32>
      %89 = arith.maximumf %87, %88 : vector<8x64xf32>
      %c0_63 = arith.constant 0 : index
      %c0_64 = arith.constant 0 : index
      %90 = vector.load %arg15[%c0_63, %c0_64] : memref<64x32xf32, #tpu.memory_space<vmem>>, vector<64x32xf32>
      %cst_65 = arith.constant dense<0.000000e+00> : vector<8x32xf32>
      %91 = tpu.matmul %89, %90, %cst_65 {dimension_numbers = #tpu.dot_dimension_numbers<[1], [0], [0], [1], [0, 0, 1, 1], [], []>} : vector<8x64xf32>, vector<64x32xf32>, vector<8x32xf32> -> vector<8x32xf32>
      %c0_66 = arith.constant 0 : index
      %c0_67 = arith.constant 0 : index
      %92 = vector.load %arg16[%c0_66, %c0_67] : memref<1x32xf32, #tpu.memory_space<vmem>>, vector<1x32xf32>
      %93 = vector.broadcast %92 : vector<1x32xf32> to vector<8x32xf32>
      %94 = arith.addf %91, %93 : vector<8x32xf32>
      %95 = arith.addf %82, %94 : vector<8x32xf32>
      %c0_68 = arith.constant 0 : index
      %c0_69 = arith.constant 0 : index
      %96 = vector.load %arg19[%c0_68, %c0_69] : memref<1x32xf32, #tpu.memory_space<vmem>>, vector<1x32xf32>
      %c0_70 = arith.constant 0 : index
      %c0_71 = arith.constant 0 : index
      %97 = vector.load %arg20[%c0_70, %c0_71] : memref<1x32xf32, #tpu.memory_space<vmem>>, vector<1x32xf32>
      %cst_72 = arith.constant dense<0.000000e+00> : vector<8xf32>
      %98 = vector.multi_reduction <add>, %95, %cst_72 [1] : vector<8x32xf32> to vector<8xf32>
      %99 = vector.shape_cast %98 : vector<8xf32> to vector<8x1xf32>
      %cst_73 = arith.constant 3.200000e+01 : f32
      %100 = vector.broadcast %cst_73 : f32 to vector<8x1xf32>
      %101 = arith.divf %99, %100 : vector<8x1xf32>
      %102 = vector.broadcast %101 : vector<8x1xf32> to vector<8x32xf32>
      %103 = arith.subf %95, %102 : vector<8x32xf32>
      %104 = arith.mulf %103, %103 : vector<8x32xf32>
      %cst_74 = arith.constant dense<0.000000e+00> : vector<8xf32>
      %105 = vector.multi_reduction <add>, %104, %cst_74 [1] : vector<8x32xf32> to vector<8xf32>
      %106 = vector.shape_cast %105 : vector<8xf32> to vector<8x1xf32>
      %cst_75 = arith.constant 3.200000e+01 : f32
      %107 = vector.broadcast %cst_75 : f32 to vector<8x1xf32>
      %108 = arith.divf %106, %107 : vector<8x1xf32>
      %cst_76 = arith.constant 9.99999974E-6 : f32
      %109 = vector.broadcast %cst_76 : f32 to vector<8x1xf32>
      %110 = arith.addf %108, %109 : vector<8x1xf32>
      %111 = math.rsqrt %110 : vector<8x1xf32>
      %112 = vector.broadcast %101 : vector<8x1xf32> to vector<8x32xf32>
      %113 = arith.subf %95, %112 : vector<8x32xf32>
      %114 = vector.broadcast %111 : vector<8x1xf32> to vector<8x32xf32>
      %115 = arith.mulf %113, %114 : vector<8x32xf32>
      %116 = vector.broadcast %96 : vector<1x32xf32> to vector<8x32xf32>
      %117 = arith.mulf %115, %116 : vector<8x32xf32>
      %118 = vector.broadcast %97 : vector<1x32xf32> to vector<8x32xf32>
      %119 = arith.addf %117, %118 : vector<8x32xf32>
      %c0_77 = arith.constant 0 : index
      %c0_78 = arith.constant 0 : index
      %c0_79 = arith.constant 0 : index
      %120 = vector.load %arg21[%c0_77, %c0_78, %c0_79] : memref<1x8x32xf32, #tpu.memory_space<vmem>>, vector<1x8x32xf32>
      %121 = vector.shape_cast %120 : vector<1x8x32xf32> to vector<8x32xf32>
      %122 = vector.shape_cast %119 : vector<8x32xf32> to vector<1x8x32xf32>
      tpu.vector_store %arg21[%c0_77, %c0_78, %c0_79], %122 {strides = array<i32>} : memref<1x8x32xf32, #tpu.memory_space<vmem>>, vector<1x8x32xf32>,
    } else {
    }
    return
  }
  func.func @transform_0(%arg0: i32, %arg1: i32, %arg2: i32) -> (i32, i32, i32) {
    %c0_i32 = arith.constant 0 : i32
    %c0_i32_0 = arith.constant 0 : i32
    return %arg0, %arg1, %c0_i32 : i32, i32, i32
  }
  func.func @transform_1(%arg0: i32, %arg1: i32, %arg2: i32) -> (i32, i32, i32) {
    %c0_i32 = arith.constant 0 : i32
    %c0_i32_0 = arith.constant 0 : i32
    %c0_i32_1 = arith.constant 0 : i32
    return %arg0, %c0_i32, %c0_i32_0 : i32, i32, i32
  }
  func.func @transform_2(%arg0: i32, %arg1: i32, %arg2: i32) -> (i32, i32, i32) {
    %c0_i32 = arith.constant 0 : i32
    %c0_i32_0 = arith.constant 0 : i32
    %c0_i32_1 = arith.constant 0 : i32
    return %arg2, %c0_i32, %c0_i32_0 : i32, i32, i32
  }
  func.func @transform_3(%arg0: i32, %arg1: i32, %arg2: i32) -> (i32, i32, i32) {
    %c0_i32 = arith.constant 0 : i32
    %c0_i32_0 = arith.constant 0 : i32
    %c0_i32_1 = arith.constant 0 : i32
    return %arg2, %c0_i32, %c0_i32_0 : i32, i32, i32
  }
  func.func @transform_4(%arg0: i32, %arg1: i32, %arg2: i32) -> (i32, i32, i32) {
    %c0_i32 = arith.constant 0 : i32
    %c0_i32_0 = arith.constant 0 : i32
    %c0_i32_1 = arith.constant 0 : i32
    return %arg2, %c0_i32, %c0_i32_0 : i32, i32, i32
  }
  func.func @transform_5(%arg0: i32, %arg1: i32, %arg2: i32) -> (i32, i32, i32) {
    %c0_i32 = arith.constant 0 : i32
    %c0_i32_0 = arith.constant 0 : i32
    %c0_i32_1 = arith.constant 0 : i32
    return %arg2, %c0_i32, %c0_i32_0 : i32, i32, i32
  }
  func.func @transform_6(%arg0: i32, %arg1: i32, %arg2: i32) -> (i32, i32, i32) {
    %c0_i32 = arith.constant 0 : i32
    %c0_i32_0 = arith.constant 0 : i32
    %c0_i32_1 = arith.constant 0 : i32
    return %arg2, %c0_i32, %c0_i32_0 : i32, i32, i32
  }
  func.func @transform_7(%arg0: i32, %arg1: i32, %arg2: i32) -> (i32, i32, i32) {
    %c0_i32 = arith.constant 0 : i32
    %c0_i32_0 = arith.constant 0 : i32
    %c0_i32_1 = arith.constant 0 : i32
    return %arg2, %c0_i32, %c0_i32_0 : i32, i32, i32
  }
  func.func @transform_8(%arg0: i32, %arg1: i32, %arg2: i32) -> (i32, i32, i32) {
    %c0_i32 = arith.constant 0 : i32
    %c0_i32_0 = arith.constant 0 : i32
    %c0_i32_1 = arith.constant 0 : i32
    return %arg2, %c0_i32, %c0_i32_0 : i32, i32, i32
  }
  func.func @transform_9(%arg0: i32, %arg1: i32, %arg2: i32) -> (i32, i32) {
    %c0_i32 = arith.constant 0 : i32
    %c0_i32_0 = arith.constant 0 : i32
    %c0_i32_1 = arith.constant 0 : i32
    return %c0_i32, %c0_i32_0 : i32, i32
  }
  func.func @transform_10(%arg0: i32, %arg1: i32, %arg2: i32) -> (i32, i32) {
    %c0_i32 = arith.constant 0 : i32
    %c0_i32_0 = arith.constant 0 : i32
    %c0_i32_1 = arith.constant 0 : i32
    return %c0_i32, %c0_i32_0 : i32, i32
  }
  func.func @transform_11(%arg0: i32, %arg1: i32, %arg2: i32) -> (i32, i32) {
    %c0_i32 = arith.constant 0 : i32
    %c0_i32_0 = arith.constant 0 : i32
    %c0_i32_1 = arith.constant 0 : i32
    return %c0_i32, %c0_i32_0 : i32, i32
  }
  func.func @transform_12(%arg0: i32, %arg1: i32, %arg2: i32) -> (i32, i32) {
    %c0_i32 = arith.constant 0 : i32
    %c0_i32_0 = arith.constant 0 : i32
    %c0_i32_1 = arith.constant 0 : i32
    return %c0_i32, %c0_i32_0 : i32, i32
  }
  func.func @transform_13(%arg0: i32, %arg1: i32, %arg2: i32) -> (i32, i32) {
    %c0_i32 = arith.constant 0 : i32
    %c0_i32_0 = arith.constant 0 : i32
    %c0_i32_1 = arith.constant 0 : i32
    return %c0_i32, %c0_i32_0 : i32, i32
  }
  func.func @transform_14(%arg0: i32, %arg1: i32, %arg2: i32) -> (i32, i32) {
    %c0_i32 = arith.constant 0 : i32
    %c0_i32_0 = arith.constant 0 : i32
    %c0_i32_1 = arith.constant 0 : i32
    return %c0_i32, %c0_i32_0 : i32, i32
  }
  func.func @transform_15(%arg0: i32, %arg1: i32, %arg2: i32) -> (i32, i32) {
    %c0_i32 = arith.constant 0 : i32
    %c0_i32_0 = arith.constant 0 : i32
    %c0_i32_1 = arith.constant 0 : i32
    return %c0_i32, %c0_i32_0 : i32, i32
  }
  func.func @transform_16(%arg0: i32, %arg1: i32, %arg2: i32) -> (i32, i32) {
    %c0_i32 = arith.constant 0 : i32
    %c0_i32_0 = arith.constant 0 : i32
    %c0_i32_1 = arith.constant 0 : i32
    return %c0_i32, %c0_i32_0 : i32, i32
  }
  func.func @transform_17(%arg0: i32, %arg1: i32, %arg2: i32) -> (i32, i32) {
    %c0_i32 = arith.constant 0 : i32
    %c0_i32_0 = arith.constant 0 : i32
    %c0_i32_1 = arith.constant 0 : i32
    return %c0_i32, %c0_i32_0 : i32, i32
  }
  func.func @transform_18(%arg0: i32, %arg1: i32, %arg2: i32) -> (i32, i32, i32) {
    %c0_i32 = arith.constant 0 : i32
    %c0_i32_0 = arith.constant 0 : i32
    return %arg0, %arg1, %c0_i32 : i32, i32, i32
  }
  func.func @transform_19(%arg0: i32, %arg1: i32, %arg2: i32) -> (i32, i32, i32, i32) {
    %c0_i32 = arith.constant 0 : i32
    %c0_i32_0 = arith.constant 0 : i32
    return %arg0, %arg2, %arg1, %c0_i32 : i32, i32, i32, i32
  }
}

</mosaic_0001>

<bundles_post_ra>
// kernel: tpu_custom_call.1
= control target key start
LH: loop header
LB: loop body
LE: loop exit
PB: predicated region body
PF: predicated region fallthrough
CT: control target
= control target key end

     0   :  { %s2670_s0 = inlined_call_operand.vmem [shape: f32[2,8,32], index: 0, kind: input, shape index: {}]   ;;  %s2671_s1 = inlined_call_operand.vmem [shape: f32[2,8,32], index: 1, kind: input, shape index: {}]   ;;  %s2672_s2 = inlined_call_operand.vmem [shape: f32[4,32,8], index: 2, kind: input, shape index: {}]   ;;  %s2673_s3 = inlined_call_operand.vmem [shape: f32[4,1,8], index: 3, kind: input, shape index: {}]   ;;  %s2674_s4 = inlined_call_operand.vmem [shape: f32[4,32,8], index: 4, kind: input, shape index: {}]   ;;  %s2675_s5 = inlined_call_operand.vmem [shape: f32[4,1,8], index: 5, kind: input, shape index: {}]   ;;  %s2676_s6 = inlined_call_operand.vmem [shape: f32[4,32,8], index: 6, kind: input, shape index: {}]   ;;  %s2677_s7 = inlined_call_operand.vmem [shape: f32[4,1,8], index: 7, kind: input, shape index: {}]   ;;  %s2678_s8 = inlined_call_operand.vmem [shape: f32[4,8,32], index: 8, kind: input, shape index: {}]   ;;  %s2679_s9 = inlined_call_operand.vmem [shape: f32[1,32], index: 9, kind: input, shape index: {}]   ;;  %s2680_s10 = inlined_call_operand.vmem [shape: f32[32,64], index: 10, kind: input, shape index: {}]   ;;  %s2681_s11 = inlined_call_operand.vmem [shape: f32[1,64], index: 11, kind: input, shape index: {}]   ;;  %s2682_s12 = inlined_call_operand.vmem [shape: f32[64,32], index: 12, kind: input, shape index: {}]   ;;  %s2683_s13 = inlined_call_operand.vmem [shape: f32[1,32], index: 13, kind: input, shape index: {}]   ;;  %s2684_s14 = inlined_call_operand.vmem [shape: f32[1,32], index: 14, kind: input, shape index: {}]   ;;  %s2685_s15 = inlined_call_operand.vmem [shape: f32[1,32], index: 15, kind: input, shape index: {}]   ;;  %s2686_s16 = inlined_call_operand.vmem [shape: f32[1,32], index: 16, kind: input, shape index: {}]   ;;  %s2687_s17 = inlined_call_operand.vmem [shape: f32[1,32], index: 17, kind: input, shape index: {}]   ;;  %s2688_s18 = inlined_call_operand.hbm [shape: f32[2,8,32], index: 18, kind: output, shape index: {0}]   ;;  %s2689_s19 = inlined_call_operand.hbm [shape: f32[2,4,8,8], index: 19, kind: output, shape index: {1}]  }
   0x1   :  { %2714 = sst [smem:[#allocation27_spill]] %s2670_s0 }
   0x2   :  { %2715 = sst [smem:[#allocation28_spill]] %s2671_s1 }
   0x3   :  { %2716 = sst [smem:[#allocation29_spill]] %s2672_s2 }
   0x4   :  { %2717 = sst [smem:[#allocation30_spill]] %s2673_s3 }
   0x5   :  { %2718 = sst [smem:[#allocation31_spill]] %s2674_s4 }
   0x6   :  { %2719 = sst [smem:[#allocation32_spill]] %s2675_s5 }
   0x7   :  { %2720 = sst [smem:[#allocation33_spill]] %s2681_s11 }
   0x8   :  { %2721 = sst [smem:[#allocation34_spill]] %s2683_s13 }
   0x9   :  { %2722 = sst [smem:[#allocation35_spill]] %s2685_s15 }
   0xa   :  { %2723 = sst [smem:[#allocation36_spill]] %s2686_s16 }
   0xb   :  { %2724 = sst [smem:[#allocation37_spill]] %s2687_s17 }
   0xc   :  { %2725 = sst [smem:[#allocation38_spill]] %s2688_s18 }
   0xd   :  { %2726 = sst [smem:[#allocation39_spill]] %s2689_s19 }
   0xe   :  { %25 = vsyncpa [#allocation4], 0 }
   0xf   :  { %27 = vsyncpa [#allocation4 + $0x1], 0 }
  0x10   :  { %28 = vsyncpa [#allocation6], 0 }
  0x11   :  { %30 = vsyncpa [#allocation6 + $0x1], 0  ;;  %s2291_s0 = smov 0   ;;  %s2293_s30 = smov 0  }
  0x12   :  { %s2295_s20 = smov 0   ;;  %s2297_s21 = smov 0  }
  0x13   :  { %s2299_s1 = smov 0   ;;  %s2301_s22 = smov 0  }
  0x14   :  { %s2303_s2 = smov 0   ;;  %s2305_s23 = smov 0  }
  0x15   :  { %s2307_s24 = smov 0   ;;  %s2309_s25 = smov 0  }
  0x16   :  { %s2311_s3 = smov 0  }
  0x17 LB: > { %2727 = sst [smem:[#allocation9_spill]] %s2142_s0  ;;  %s1763_s26 = sadd.s32 4294967295, %s2182_s3   ;;  %s2182_s3 = sphi %s2311_s3, %s36_s3   ;;  %s2178_s25 = sphi %s2309_s25, %s2791_s25   ;;  %s2174_s24 = sphi %s2307_s24, %s2790_s24   ;;  %s2170_s23 = sphi %s2305_s23, %s2789_s23   ;;  %s2166_s2 = sphi %s2303_s2, %s2788_s2   ;;  %s2162_s22 = sphi %s2301_s22, %s2787_s22   ;;  %s2158_s1 = sphi %s2299_s1, %s2786_s1   ;;  %s2154_s21 = sphi %s2297_s21, %s2785_s21   ;;  %s2150_s20 = sphi %s2295_s20, %s2784_s20   ;;  %s2146_s30 = sphi %s2293_s30, %s2783_s30   ;;  %s2142_s0 = sphi %s2291_s0, %s2782_s0  }
  0x18   : > { %2728 = sst [smem:[#allocation10_spill]] %s2146_s30  ;;  %s1764_s27 = sadd.s32 4294967294, %s2182_s3  }
  0x19   : > { %2729 = sst [smem:[#allocation11_spill]] %s2150_s20  ;;  %s48_s28 = sadd.s32 1, %s2174_s24 }
  0x1a   : > { %2730 = sst [smem:[#allocation12_spill]] %s2154_s21  ;;  %s55_s29 = sadd.s32 1, %s2178_s25 }
  0x1b   : > { %2731 = sst [smem:[#allocation13_spill]] %s2158_s1  ;;  %p49_p0 = scmp.ge.s32.totalorder %s48_s28, 4 }
  0x1c   : > { %2732 = sst [smem:[#allocation14_spill]] %s2162_s22  ;;  %s489_s19 = sadd.s32 1, %s2162_s22 }
  0x1d   : > { %2733 = sst [smem:[#allocation15_spill]] %s2170_s23  ;;  %p499_p1 = scmp.ne.s32.totalorder %s2162_s22, %s2158_s1 }
  0x1e   : > { %2734 = sst [smem:[#allocation16_spill]] %s2174_s24  ;;  %p2353_p2 = scmp.eq.s32.totalorder %s1763_s26, 7 }
  0x1f   : > { %2735 = sst [smem:[#allocation17_spill]] %s2178_s25  ;;  %s2793_s28 = smov (%p49_p0, %s48_s28), 0 }
  0x20   : > { %2736 = sst [smem:[#allocation18_spill]] %s2182_s3  ;;  %s2795_s29 = smov (!%p49_p0, %s55_s29), %s2178_s25 }
  0x21   : > { %2738 = sst [smem:[#allocation19_spill]] %s2793_s28  ;;  %p2362_p3 = por %p2353_p2, %p499_p1 }
  0x22   : > { %p505_p4 = scmp.ne.s32.totalorder %s2158_s1, %s2154_s21  ;;  %p57_p5 = scmp.ge.s32.totalorder %s2795_s29, 2 }
  0x23   : > { %s2739_s17 = scalar_select %p2362_p3, 1, 0 }
  0x24   : > { %p2368_p6 = scmp.eq.s32.totalorder %s1764_s27, 7  ;;  %s513_s16 = ssub.s32 %s2174_s24, %s2793_s28 }
  0x25   : > { %2740 = sst [smem:[#allocation20_spill]] %s2739_s17  ;;  %s519_s13 = sadd.s32 1, %s2150_s20 }
  0x26   : > { %s2797_s29 = smov (%p57_p5, %s2795_s29), 0  ;;  %p2379_p7 = por %p2368_p6, %p505_p4 }
  0x27   : > { %2742 = sst [smem:[#allocation21_spill]] %s2797_s29  ;;  %p529_p8 = scmp.ne.s32.totalorder %s2150_s20, %s2146_s30 }
  0x28   : > { %s2743_s11 = scalar_select %p2379_p7, 1, 0 }
  0x29   : > { %s484_s21 = ssub.s32 %s2178_s25, %s2797_s29  ;;  %p535_p9 = scmp.ne.s32.totalorder %s2146_s30, %s2142_s0 }
  0x2a   : > { %2744 = sst [smem:[#allocation22_spill]] %s2743_s11  ;;  %p487_p10 = scmp.eq.s32.totalorder %s484_s21, 0 }
  0x2b   : > { %s514_s27 = sor.u32 %s513_s16, %s484_s21  ;;  %p2391_p12 = por %p529_p8, %p2353_p2 }
  0x2c   : > { %p517_p11 = scmp.eq.s32.totalorder %s514_s27, 0  ;;  %p2403_p13 = por %p535_p9, %p2368_p6 }
  0x2d   : > { %s2745_s17 = scalar_select %p2391_p12, 1, 0 }
  0x2e   : > { %s2396_s28 = scalar_select %p487_p10, %s2162_s22, %s489_s19  }
  0x2f   : > { %2746 = sst [smem:[#allocation23_spill]] %s2745_s17  ;;  %p1767_p0 = scmp.ge.s32.totalorder %s2182_s3, 1 }
  0x30   : > { %2747 = sst [smem:[#allocation24_spill]] %s2396_s28  ;;  %p647_p1 = scmp.lt.s32.totalorder %s2182_s3, 9 }
  0x31   : > { %s2399_s24 = scalar_select %p517_p11, %s2150_s20, %s519_s13  }
  0x32   : > { %s2749_s15 = scalar_select %p2403_p13, 1, 0 }
  0x33   : > { %2748 = sst [smem:[#allocation25_spill]] %s2399_s24  ;;  %p648_p4 = pnand %p1767_p0, %p647_p1 }
  0x34   : > { %2750 = sst [smem:[#allocation26_spill]] %s2749_s15  ;;  %s2699_s16 = sand.u32 (!%p648_p4), 1, %s2158_s1  }
  0x35   : > { %651 = sbr.rel (%p648_p4) target bundleno = 2249 (0x8c9), region = 92  ;;  %s2701_s13 = sand.u32 (!%p648_p4), 1, %s2146_s30  }
  0x36   : > { %s2413_s18 = sshll.u32 (!%p648_p4), %s2699_s16, 3  ;;  %s2417_s19 = sshll.u32 (!%p648_p4), %s2701_s13, 3 }
  0x37   : > { %p742_p2 = scmp.lt.s32.totalorder (!%p648_p4), %s2170_s23, 1  ;;  %p753_p5 = scmp.lt.s32.totalorder (!%p648_p4), %s2166_s2, 3 }
  0x38   : > { %s2751_s16 = sld [smem:[#allocation27_spill]] (!%p648_p4)  ;;  %s734_s29 = scalar_lea.vmem (!%p648_p4), [#allocation3], %s2413_s18 }
  0x39   : > { %s2752_s24 = sld [smem:[#allocation28_spill]] (!%p648_p4)  ;;  %s741_s17 = scalar_lea.vmem (!%p648_p4), [#allocation5], %s2417_s19 }
  0x3a   : > { %s743_s21 = scalar_select %p742_p2, %s2170_s23, 1 }
  0x3b   : > { %s2423_s26 = scalar_select %p753_p5, %s2166_s2, 3 }
  0x3c   : > { %s1770_s27 = sshll.u32 %s743_s21, 3  ;;  %s2754_s21 = sld [smem:[#allocation29_spill]] }
  0x3d   : > { %s1807_s15 = sshll.u32 %s2423_s26, 5  ;;  %s2755_s4 = sld [smem:[#allocation31_spill]] }
  0x3e   : > { %s748_s28 = scalar_lea.vmem %s2751_s16, %s1770_s27  ;;  %s2756_s5 = sld [smem:[#allocation32_spill]] }
  0x3f   : > { %s752_s20 = scalar_lea.vmem %s2752_s24, %s1770_s27  ;;  %v2436_v0 = vld [vmem:[%s748_s28] sm:$0xff]  ;;  %s2457_s3 = scalar_lea.vmem %s2676_s6, %s1807_s15 }
  0x40   : > { %v2438_v1 = vld [vmem:[%s752_s20] sm:$0xff]  ;;  %s776_s30 = scalar_lea.vmem %s2677_s7, %s2423_s26  ;;  %s1778_s1 = sshll.u32 %s2423_s26, 3 }
  0x41   : > { %s2467_s25 = scalar_lea.vmem %s2678_s8, %s1778_s1  ;;  %p1779_p6 = scmp.ne.s32.totalorder %s2166_s2, 0 }
  0x42   : > { %s2443_s23 = scalar_lea.vmem %s2754_s21, %s1807_s15 }
  0x43   : > { %s2448_s16 = scalar_lea.vmem %s2755_s4, %s1807_s15  ;;  %786 = sbr.rel (%p1779_p6) target bundleno = 74 (0x4a), region = 96 }
  0x44   : > { %s768_s13 = scalar_lea.vmem %s2756_s5, %s2423_s26 }
  0x48   : > { %vm787_vm0 = vcmask 261120   ;;  %v2184_v2 = vmov 0.0  }
  0x49   : > { %788 = vst.msk [vmem:[#allocation2] sm:$0xff] %vm787_vm0, %v2184_v2 }
  0x4a PF: > { %v877_v3 = vld [vmem:[%s2448_s16 + $0x18] sm:$0xff]  ;;  %v2185_v5 = vmov 0.0   ;;  %v876_v6 = vld [vmem:[%s2448_s16 + $0x10] sm:$0xff]  ;;  %v875_v8 = vld [vmem:[%s2448_s16 + $0x8] sm:$0xff]  ;;  %vm800_vm1 = vcmask 261120   ;;  %vm2186_vm2 = vmmov 0  }
  0x4b   : > { %v792_v4 = vld [vmem:[%s2443_s23 + $0x18] sm:$0xff]  ;;  %1856 = vmatprep.subr.mxu1 %v2185_v5  ;;  %1845 = vmatprep.subr.mxu0 %v2185_v5  ;;  %v791_v7 = vld [vmem:[%s2443_s23 + $0x10] sm:$0xff]  ;;  %v790_v9 = vld [vmem:[%s2443_s23 + $0x8] sm:$0xff]  ;;  %s2758_s24 = sld [smem:[#allocation30_spill]]  ;;  %vm1039_vm3 = vcmask 64512   ;;  %p1790_p8 = scmp.ne.s32.totalorder %s2166_s2, 3 }
  0x4c   : > { %1857 = vmatpush3.msra.mxu1 %v877_v3  ;;  %1846 = vmatpush3.msra.mxu0 %v792_v4  ;;  %v874_v10 = vld [vmem:[%s2448_s16] sm:$0xff]  ;;  %v961_v20 = vld [vmem:[%s2457_s3 + $0x18] sm:$0xff]  ;;  %v960_v21 = vld [vmem:[%s2457_s3 + $0x10] sm:$0xff]  ;;  %s2760_s21 = sld [smem:[#allocation35_spill]] (!%p1790_p8) }
  0x4d   : > { %1858 = vmatprep.subr.mxu1 %v2185_v5  ;;  %1847 = vmatprep.subr.mxu0 %v2185_v5  ;;  %v789_v11 = vld [vmem:[%s2443_s23] sm:$0xff]  ;;  %v959_v22 = vld [vmem:[%s2457_s3 + $0x8] sm:$0xff]  ;;  %s2761_s0 = sld [smem:[#allocation33_spill]] (!%p1790_p8) }
  0x4e   : > { %1859 = vmatpush3.msra.mxu1 %v876_v6  ;;  %1848 = vmatpush3.msra.mxu0 %v791_v7  ;;  %v1782_v12 = vld [vmem:[%s768_s13] ss:$0 sm:$0xff]  ;;  %s2762_s20 = sld [smem:[#allocation34_spill]] (!%p1790_p8) }
  0x4f   : > { %1860 = vmatprep.subr.mxu1 %v2185_v5  ;;  %1849 = vmatprep.subr.mxu0 %v2185_v5  ;;  %v958_v23 = vld [vmem:[%s2457_s3] sm:$0xff]  ;;  %s2763_s1 = sld [smem:[#allocation36_spill]] (!%p1790_p8) }
  0x50   : > { %1861 = vmatpush3.msra.mxu1 %v875_v8  ;;  %1850 = vmatpush3.msra.mxu0 %v790_v9  ;;  %v1784_v33 = vld [vmem:[%s776_s30] ss:$0 sm:$0xff] }
  0x51   : > { %1862 = vmatprep.subr.mxu1 %v2185_v5  ;;  %1864 = vmatprep.mubr.msk.f32.mxu1 %vm2186_vm2, %v2185_v5  ;;  %s2759_s11 = scalar_lea.vmem %s2758_s24, %s2423_s26  ;;  %v1203_v37 = vld [vmem:[%s2467_s25] sm:$0xff]  ;;  %s2764_s25 = sld [smem:[#allocation37_spill]] (!%p1790_p8) }
  0x52   : > { %1863 = vmatpush3.msra.mxu1 %v874_v10  ;;  %1851 = vmatprep.subr.mxu0 %v2185_v5  ;;  %v1780_v14 = vld [vmem:[%s2759_s11] ss:$0 sm:$0xff] }
  0x53   : > { %1865 = vmatmul.mubr.msk.f32.vlgmr.msra.gmra.mxu1 %vm800_vm1, %v2438_v1  ;;  %1852 = vmatpush3.msra.mxu0 %v789_v11  ;;  %v1202_v43 = vld [vmem:[#allocation2] sm:$0xff] }
  0x54   : > { %1853 = vmatprep.mubr.msk.f32.mxu0 %vm2186_vm2, %v2185_v5  ;;  %1878 = vmatprep.subr.mxu1 %v2185_v5 }
  0x55   : > { %1854 = vmatmul.mubr.msk.f32.vlgmr.msra.gmra.mxu0 %vm800_vm1, %v2436_v0  ;;  %1880 = vmatprep.mubr.msk.f32.mxu1 %vm2186_vm2, %v2185_v5 }
  0x56   : > { %1867 = vmatprep.subr.mxu0 %v2185_v5  ;;  %1875 = vmatprep.mubr.msk.f32.mxu0 %vm2186_vm2, %v2185_v5 }
  0x57   : > { %1868 = vmatpush3.msra.mxu0 %v961_v20 }
  0x58   : > { %1869 = vmatprep.subr.mxu0 %v2185_v5 }
  0x59   : > { %1870 = vmatpush3.msra.mxu0 %v960_v21 }
  0x5a   : > { %1871 = vmatprep.subr.mxu0 %v2185_v5 }
  0x5b   : > { %1872 = vmatpush3.msra.mxu0 %v959_v22 }
  0x5c   : > { %1873 = vmatprep.subr.mxu0 %v2185_v5 }
  0x5d   : > { %1874 = vmatpush3.msra.mxu0 %v958_v23 }
  0x5e   : > { %1876 = vmatmul.mubr.msk.f32.vlgmr.msra.gmra.mxu0 %vm800_vm1, %v2438_v1  ;;  %1888 = vmatprep.subr.mxu0 %v2185_v5 }
  0x5f   : > { %1890 = vmatprep.mubr.msk.f32.mxu0 %vm2186_vm2, %v2185_v5  ;;  %1889 = vmatpush3.msra.mxu0 %v1203_v37 }
 0x113   : > { %v954_v13 = vpop.f32.mrf.mxu1 }
 0x114   : > { %v955_v15 = vadd.f32 %v1782_v12, %v954_v13 }
 0x115   : > { %v870_v16 = vpop.f32.mrf.mxu0  ;;  %v1866_v17 = vpop.f32.mrf.mxu1 }
 0x116   : > { %v871_v18 = vadd.f32 %v1780_v14, %v870_v16  ;;  %1879 = vmatpush3.xpose.msk.msra.mxu1 %vm1039_vm3, %v955_v15 }
 0x117   : > { %v1855_v19 = vpop.f32.mrf.mxu0  ;;  %1883 = vmatprep.subr.mxu1 %v2185_v5 }
 0x119   : > { %1881 = vmatmul.mubr.msk.f32.vlgmr.msra.gmra.mxu1 %vm1039_vm3, %v871_v18 }
 0x11a   : > { %1885 = vmatprep.mubr.msk.f32.mxu1 %vm2186_vm2, %v2185_v5 }
 0x11e   : > { %v1035_v34 = vpop.f32.mrf.mxu0 }
 0x11f   : > { %v1036_v35 = vadd.f32 %v1784_v33, %v1035_v34 }
 0x120   : > { %v1877_v36 = vpop.f32.mrf.mxu0 }
 0x121   : > { %1884 = vmatpush3.msra.mxu1 %v1036_v35 }
 0x1d9   : > { %v1112_v24 = vpop.f32.mrf.mxu1 }
 0x1da   : > { %v1116_v25 = vmul.f32 0.35355338, %v1112_v24 }
 0x1db   : > { %v1882_v26 = vpop.f32.mrf.mxu1 }
 0x1dc   : > { %v1117_v27 = vsel %vm1039_vm3, %v1116_v25, -inf }
 0x1dd   : > { %1118 = vmax.xlane.f32.xlu0 %v1117_v27 }
 0x266   : > { %v1119_v28 = vpop.xlane.xlu0 %1118 }
 0x267   : > { %v1120_v29 = vsub.f32 %v1116_v25, %v1119_v28 }
 0x269   : > { %v1121_v30 = vmul.f32 1.442695, %v1120_v29 }
 0x26b   : > { %2028 = vpow2.f32 %v1121_v30 }
 0x278   : > { %v2029_v31 = vpop.eup %2028 }
 0x279   : > { %v1123_v32 = vsel %vm1039_vm3, %v2029_v31, 0.0 }
 0x27a   : > { %1124 = vadd.xlane.f32.xlu0 %v1123_v32 }
 0x303   : > { %v1125_v38 = vpop.xlane.xlu0 %1124 }
 0x304   : > { %2030 = vrcp.f32 %v1125_v38 }
 0x311   : > { %v2031_v39 = vpop.eup %2030 }
 0x312   : > { %v1127_v40 = vmul.f32 %v2031_v39, %v2029_v31 }
 0x314   : > { %1128 = vst.msk [vmem:[%s741_s17] sm:$0xff] %vm1039_vm3, %v1127_v40  ;;  %1886 = vmatmul.mubr.msk.f32.vlgmr.msra.gmra.mxu1 %vm1039_vm3, %v1127_v40 }
 0x3d4   : > { %v1198_v41 = vpop.f32.mrf.mxu1 }
 0x3d5   : > { %1891 = vmatmul.mubr.msk.f32.vlgmr.msra.gmra.mxu0 %vm1039_vm3, %v1198_v41 }
 0x3d6   : > { %v1887_v42 = vpop.f32.mrf.mxu1 }
 0x494   : > { %1282 = sbr.rel (%p1790_p8) target bundleno = 2199 (0x897), region = 100 }
 0x495   : > { %v1273_v44 = vpop.f32.mrf.mxu0 }
 0x496   : > { %v1277_v45 = vadd.f32 %v1273_v44, %v1202_v43 }
 0x497   : > { %v1892_v46 = vpop.f32.mrf.mxu0 }
 0x498   : > { %1278 = vst.msk [vmem:[#allocation2] sm:$0xff] %vm800_vm1, %v1277_v45 }
 0x499   : > { %v1791_v48 = vld [vmem:[%s2679_s9] ss:$0 sm:$0xff]  ;;  %v1326_v57 = vld [vmem:[%s2680_s10 + $0x18] sm:$0xff]  ;;  %v2187_v58 = vmov 0.0   ;;  %v1325_v59 = vld [vmem:[%s2680_s10 + $0x10] sm:$0xff]  ;;  %vm2188_vm4 = vmmov 0  }
 0x49a   : > { %1893 = vmatprep.subr.mxu0 %v2187_v58  ;;  %1901 = vmatprep.mubr.msk.f32.mxu0 %vm2188_vm4, %v2187_v58  ;;  %v1324_v60 = vld [vmem:[%s2680_s10 + $0x8] sm:$0xff]  ;;  %v1323_v61 = vld [vmem:[%s2680_s10] sm:$0xff]  ;;  %v1415_v62 = vld [vmem:[%s2682_s12 + $0x38] sm:$0xff]  ;;  %vm1423_vm5 = vcmask 523264  }
 0x49b   : > { %1894 = vmatpush3.msra.mxu0 %v1326_v57  ;;  %1904 = vmatprep.subr.mxu1 %v2187_v58  ;;  %v1414_v63 = vld [vmem:[%s2682_s12 + $0x30] sm:$0xff]  ;;  %v1412_v1 = vld [vmem:[%s2682_s12 + $0x20] sm:$0xff]  ;;  %v1411_v2 = vld [vmem:[%s2682_s12 + $0x18] sm:$0xff] }
 0x49c   : > { %1895 = vmatprep.subr.mxu0 %v2187_v58  ;;  %1920 = vmatprep.mubr.msk.f32.mxu1 %vm2188_vm4, %v2187_v58  ;;  %v1792_v7 = vld [vmem:[%s2684_s14] ss:$0 sm:$0xff]  ;;  %v1410_v12 = vld [vmem:[%s2682_s12 + $0x10] sm:$0xff]  ;;  %v1409_v13 = vld [vmem:[%s2682_s12 + $0x8] sm:$0xff] }
 0x49d   : > { %1896 = vmatpush3.msra.mxu0 %v1325_v59  ;;  %1905 = vmatpush3.msra.mxu1 %v1415_v62  ;;  %v1793_v9 = vld [vmem:[%s2760_s21] ss:$0 sm:$0xff] }
 0x49e   : > { %1897 = vmatprep.subr.mxu0 %v2187_v58  ;;  %1906 = vmatprep.subr.mxu1 %v2187_v58  ;;  %v1408_v14 = vld [vmem:[%s2682_s12] sm:$0xff] }
 0x49f   : > { %v1283_v47 = vld [vmem:[#allocation2] sm:$0xff]  ;;  %1898 = vmatpush3.msra.mxu0 %v1324_v60  ;;  %1907 = vmatpush3.msra.mxu1 %v1414_v63 }
 0x4a0   : > { %v1291_v49 = vadd.f32 %v1791_v48, %v1283_v47  ;;  %1899 = vmatprep.subr.mxu0 %v2187_v58  ;;  %1908 = vmatprep.subr.mxu1 %v2187_v58  ;;  %v1794_v15 = vld [vmem:[%s2761_s0] ss:$0 sm:$0xff] }
 0x4a1   : > { %1900 = vmatpush3.msra.mxu0 %v1323_v61  ;;  %v1796_v20 = vld [vmem:[%s2762_s20] ss:$0 sm:$0xff] }
 0x4a2   : > { %v1292_v50 = vadd.f32 %v1291_v49, %v2436_v0  ;;  %v1413_v0 = vld [vmem:[%s2682_s12 + $0x28] sm:$0xff]  ;;  %v1798_v35 = vld [vmem:[%s2763_s1] ss:$0 sm:$0xff] }
 0x4a3   : > { %1909 = vmatpush3.msra.mxu1 %v1413_v0  ;;  %v1799_v37 = vld [vmem:[%s2764_s25] ss:$0 sm:$0xff] }
 0x4a4   : > { %v1295_v51 = vsel %vm800_vm1, %v1292_v50, 0.0  ;;  %1910 = vmatprep.subr.mxu1 %v2187_v58 }
 0x4a5   : > { %1296 = vadd.xlane.f32.xlu0 %v1295_v51  ;;  %1911 = vmatpush3.msra.mxu1 %v1412_v1 }
 0x4a6   : > { %1912 = vmatprep.subr.mxu1 %v2187_v58 }
 0x4a7   : > { %1913 = vmatpush3.msra.mxu1 %v1411_v2 }
 0x4a8   : > { %1914 = vmatprep.subr.mxu1 %v2187_v58 }
 0x4a9   : > { %1915 = vmatpush3.msra.mxu1 %v1410_v12 }
 0x4aa   : > { %1916 = vmatprep.subr.mxu1 %v2187_v58 }
 0x4ab   : > { %1917 = vmatpush3.msra.mxu1 %v1409_v13 }
 0x4ac   : > { %1918 = vmatprep.subr.mxu1 %v2187_v58 }
 0x4ad   : > { %1919 = vmatpush3.msra.mxu1 %v1408_v14 }
 0x52e   : > { %v1297_v52 = vpop.xlane.xlu0 %1296 }
 0x52f   : > { %v1299_v53 = vmul.f32 0.03125, %v1297_v52 }
 0x531   : > { %v1300_v54 = vsub.f32 %v1292_v50, %v1299_v53 }
 0x533   : > { %v1301_v55 = vmul.f32 %v1300_v54, %v1300_v54 }
 0x535   : > { %v1302_v56 = vsel %vm800_vm1, %v1301_v55, 0.0 }
 0x536   : > { %1303 = vadd.xlane.f32.xlu0 %v1302_v56 }
 0x5bf   : > { %v1304_v3 = vpop.xlane.xlu0 %1303 }
 0x5c0   : > { %v1305_v4 = vmul.f32 0.03125, %v1304_v3 }
 0x5c2   : > { %v1306_v5 = vadd.f32 1e-05, %v1305_v4 }
 0x5c4   : > { %2032 = vrsqrt.f32 %v1306_v5 }
 0x5d1   : > { %v2033_v6 = vpop.eup %2032 }
 0x5d2   : > { %v1308_v8 = vmul.f32 %v2033_v6, %v1300_v54 }
 0x5d4   : > { %v1315_v10 = vmul.f32 %v1792_v7, %v1308_v8 }
 0x5d6   : > { %v1322_v11 = vadd.f32 %v1793_v9, %v1315_v10 }
 0x5d8   : > { %1902 = vmatmul.mubr.msk.f32.vlgmr.msra.gmra.mxu0 %vm800_vm1, %v1322_v11 }
 0x698   : > { %v1403_v16 = vpop.f32.mrf.mxu0 }
 0x699   : > { %v1404_v17 = vadd.f32 %v1794_v15, %v1403_v16 }
 0x69a   : > { %v1903_v18 = vpop.f32.mrf.mxu0 }
 0x69b   : > { %v1407_v19 = vmax.f32 %v1404_v17, 0.0 }
 0x69d   : > { %1921 = vmatmul.mubr.msk.f32.vlgmr.msra.gmra.mxu1 %vm1423_vm5, %v1407_v19 }
 0x75d   : > { %v1493_v21 = vpop.f32.mrf.mxu1 }
 0x75e   : > { %v1494_v22 = vadd.f32 %v1796_v20, %v1493_v21 }
 0x75f   : > { %v1922_v23 = vpop.f32.mrf.mxu1 }
 0x760   : > { %v1497_v24 = vadd.f32 %v1494_v22, %v1322_v11 }
 0x762   : > { %v1500_v25 = vsel %vm800_vm1, %v1497_v24, 0.0 }
 0x763   : > { %1501 = vadd.xlane.f32.xlu1 %v1500_v25 }
 0x7ec   : > { %v1502_v26 = vpop.xlane.xlu1 %1501 }
 0x7ed   : > { %v1503_v27 = vmul.f32 0.03125, %v1502_v26 }
 0x7ef   : > { %v1504_v28 = vsub.f32 %v1497_v24, %v1503_v27 }
 0x7f1   : > { %v1505_v29 = vmul.f32 %v1504_v28, %v1504_v28 }
 0x7f3   : > { %v1506_v30 = vsel %vm800_vm1, %v1505_v29, 0.0 }
 0x7f4   : > { %1507 = vadd.xlane.f32.xlu1 %v1506_v30 }
 0x87d   : > { %v1508_v31 = vpop.xlane.xlu1 %1507 }
 0x87e   : > { %v1509_v32 = vmul.f32 0.03125, %v1508_v31 }
 0x880   : > { %v1510_v33 = vadd.f32 1e-05, %v1509_v32 }
 0x882   : > { %2034 = vrsqrt.f32 %v1510_v33 }
 0x88f   : > { %v2035_v34 = vpop.eup %2034 }
 0x890   : > { %v1512_v36 = vmul.f32 %v2035_v34, %v1504_v28 }
 0x892   : > { %v1519_v38 = vmul.f32 %v1798_v35, %v1512_v36 }
 0x894   : > { %v1526_v39 = vadd.f32 %v1799_v37, %v1519_v38 }
 0x896   : > { %1527 = vst.msk [vmem:[%s734_s29] sm:$0xff] %vm800_vm1, %v1526_v39 }
 0x897 PF: > { %s2765_s15 = sld [smem:[#allocation15_spill]]  ;;  %s1548_s26 = sshll.u32 %s734_s29, 4  ;;  %s1549_s26 = int_to_ptr.vmem [resolvable:$true] %s1548_s26 }
 0x898   : > { %s2766_s23 = sld [smem:[#allocation13_spill]]  ;;  %s2036_s28 = scalar_lea.vmem %s1549_s26, 128 }
 0x899   : > { %s2768_s13 = sld [smem:[#allocation38_spill]]  ;;  %p2037_p9 = scmp.ne.s32.totalorder %s1549_s26, %s2036_s28 }
 0x89a   : > { %s2189_s30 = smov [#allocation3]  }
 0x89b   : > { %p2038_p10 = pnand %p2037_p9, %p2362_p3  ;;  %s2040_s1 = sshll.u32 %s2189_s30, 4  ;;  %s2041_s1 = int_to_ptr.vmem [resolvable:$false] %s2040_s1 }
 0x89c   : > { %s2042_s27 = scalar_lea.vmem %s2041_s1, 256  ;;  %p2043_p0 = scmp.lt.s32.totalorder %s1549_s26, %s2041_s1 }
 0x89d   : > { %s1802_s22 = sshll.u32 %s2765_s15, 7  ;;  %p2039_p11 = pneg %p2038_p10 }
 0x89e   : > { %s2769_s3 = sand.u32 1, %s2766_s23   ;;  %p2044_p1 = scmp.lt.s32.totalorder %s2042_s27, %s2036_s28 }
 0x89f   : > { %s1546_s0 = scalar_lea.hbm %s2768_s13, %s1802_s22  ;;  %s1529_s20 = scalar_lea.sflag [#allocation4], %s2769_s3 }
 0x8a0   : > { %p2045_p4 = por %p2044_p1, %p2043_p0 }
 0x8a2   : > { %p2046_p2 = pnand %p2045_p4, %p2039_p11 }
 0x8a4   : > { %2049 = shalt.err (!%p2046_p2)
}
 0x8a5   : > { %s2050_s21 = scalar_lea.hbm %s1546_s0, 128  ;;  %s2054_s25 = scalar_lea.hbm %s2768_s13, 256 }
 0x8a6   : > { %p2051_p5 = scmp.ne.s32.totalorder %s1546_s0, %s2050_s21  ;;  %p2055_p9 = scmp.lt.s32.totalorder %s1546_s0, %s2768_s13 }
 0x8a7   : > { %p2056_p10 = scmp.lt.s32.totalorder %s2054_s25, %s2050_s21 }
 0x8a8   : > { %p2052_p6 = pnand %p2051_p5, %p2362_p3 }
 0x8a9   : > { %p2057_p13 = por %p2056_p10, %p2055_p9 }
 0x8aa   : > { %p2053_p8 = pneg %p2052_p6 }
 0x8ac   : > { %p2058_p7 = pnand %p2057_p13, %p2053_p8 }
 0x8ae   : > { %2061 = shalt.err (!%p2058_p7)
}
 0x8af   : > { %s2770_s24 = sld [smem:[#allocation10_spill]]  ;;  %s1803_s3 = sshll.u32 %s2765_s15, 2 }
 0x8b0   : > { %1923 = dma.vmem_to_hbm [thread:$0]  (%p2362_p3), %s1549_s26, 128, %s1546_s0, %s1529_s20  }
 0x8b1   : > { %s1564_s28 = sshll.u32 %s741_s17, 4  ;;  %s1560_s30 = sadd.s32 %s2166_s2, %s1803_s3  ;;  %s1565_s28 = int_to_ptr.vmem [resolvable:$true] %s1564_s28 }
 0x8b2   : > { %s1804_s1 = sshll.u32 %s1560_s30, 7  ;;  %s2772_s21 = sld [smem:[#allocation39_spill]] }
 0x8b3   : > { %s2062_s4 = scalar_lea.vmem %s1565_s28, 128  ;;  %s2190_s16 = smov [#allocation5]  }
 0x8b4   : > { %p2063_p7 = scmp.ne.s32.totalorder %s1565_s28, %s2062_s4  ;;  %s2066_s5 = sshll.u32 %s2190_s16, 4  ;;  %s2067_s5 = int_to_ptr.vmem [resolvable:$false] %s2066_s5 }
 0x8b5   : > { %s2774_s23 = sand.u32 1, %s2770_s24   ;;  %s2068_s15 = scalar_lea.vmem %s2067_s5, 256 }
 0x8b6   : > { %s1534_s22 = scalar_lea.sflag [#allocation6], %s2774_s23  ;;  %p2064_p13 = pnand %p2063_p7, %p2391_p12 }
 0x8b7   : > { %p2069_p3 = scmp.lt.s32.totalorder %s1565_s28, %s2067_s5  ;;  %p2070_p0 = scmp.lt.s32.totalorder %s2068_s15, %s2062_s4 }
 0x8b8   : > { %s2773_s29 = smov %s2772_s21  ;;  %s1562_s25 = scalar_lea.hbm %s2772_s21, %s1804_s1 }
 0x8b9   : > { %p2065_p11 = pneg %p2064_p13  ;;  %p2071_p1 = por %p2070_p0, %p2069_p3 }
 0x8bb   : > { %p2072_p4 = pnand %p2071_p1, %p2065_p11 }
 0x8bd   : > { %2075 = shalt.err (!%p2072_p4)
}
 0x8be   : > { %s2076_s17 = scalar_lea.hbm %s1562_s25, 128  ;;  %s2080_s0 = scalar_lea.hbm %s2773_s29, 1024 }
 0x8bf   : > { %p2077_p2 = scmp.ne.s32.totalorder %s1562_s25, %s2076_s17  ;;  %p2081_p8 = scmp.lt.s32.totalorder %s1562_s25, %s2773_s29 }
 0x8c0   : > { %p2082_p9 = scmp.lt.s32.totalorder %s2080_s0, %s2076_s17 }
 0x8c1   : > { %p2078_p5 = pnand %p2077_p2, %p2391_p12 }
 0x8c2   : > { %p2083_p10 = por %p2082_p9, %p2081_p8 }
 0x8c3   : > { %p2079_p6 = pneg %p2078_p5 }
 0x8c5   : > { %p2084_p7 = pnand %p2083_p10, %p2079_p6 }
 0x8c7   : > { %2087 = shalt.err (!%p2084_p7)
}
 0x8c8   : > { %1924 = dma.vmem_to_hbm [thread:$0]  (%p2391_p12), %s1565_s28, 128, %s1562_s25, %s1534_s22  }
 0x8c9 PF: > { %s2775_s4 = sld [smem:[#allocation18_spill]] }
 0x8ca   : > { %s2776_s5 = sld [smem:[#allocation12_spill]] }
 0x8cb   : > { %s2777_s24 = sld [smem:[#allocation22_spill]] }
 0x8cf   : > { %p1934_p13 = scmp.ge.s32.totalorder %s2775_s4, 2 }
 0x8d0   : > { %s1576_s3 = sand.u32 1, %s2776_s5  }
 0x8d1   : > { %p2778_p11 = scmp.ne.s32.totalorder %s2777_s24, 0  ;;  %s1577_s30 = scalar_lea.sflag [#allocation4], %s1576_s3 }
 0x8d3   : > { %p1928_p3 = pnand %p1934_p13, %p2778_p11 }
 0x8d5   : > { %p1929_p0 = pneg %p1928_p3 }
 0x8d7   : > { %2133 = dma.done.wait (%p1929_p0), %s1577_s30, 128  }
 0x8d8   : > { %2135 = vsyncadd (%p1929_p0), %s1577_s30, 4294967168  ;;  %s2779_s1 = sld [smem:[#allocation9_spill]] }
 0x8d9   : > { %s2780_s27 = sld [smem:[#allocation26_spill]] }
 0x8de   : > { %s1585_s18 = sand.u32 1, %s2779_s1  }
 0x8df   : > { %p2781_p1 = scmp.ne.s32.totalorder %s2780_s27, 0  ;;  %s1586_s11 = scalar_lea.sflag [#allocation6], %s1585_s18 }
 0x8e1   : > { %p1931_p4 = pnand %p1934_p13, %p2781_p1 }
 0x8e3   : > { %p1932_p2 = pneg %p1931_p4 }
 0x8e5   : > { %2137 = dma.done.wait (%p1932_p2), %s1586_s11, 128  }
 0x8e6   : > { %2139 = vsyncadd (%p1932_p2), %s1586_s11, 4294967168  ;;  %s36_s3 = sadd.s32 1, %s2775_s4   ;;  %s2782_s0 = sld [smem:[#allocation10_spill]] }
 0x8e7   : > { %p33_p12 = scmp.ge.s32.totalorder %s36_s3, 10   ;;  %s2783_s30 = sld [smem:[#allocation11_spill]] }
 0x8e8   : > { %s2784_s20 = sld [smem:[#allocation25_spill]] }
 0x8e9   : > { %s2785_s21 = sld [smem:[#allocation13_spill]] }
 0x8ea   : > { %s2786_s1 = sld [smem:[#allocation14_spill]] }
 0x8eb   : > { %s2787_s22 = sld [smem:[#allocation24_spill]]  ;;  %35 = sbr.rel (!%p33_p12) target bundleno = 23 (0x17), region = 176 }
 0x8ec   : > { %s2788_s2 = sld [smem:[#allocation16_spill]] }
 0x8ed   : > { %s2789_s23 = sld [smem:[#allocation17_spill]] }
 0x8ee   : > { %s2790_s24 = sld [smem:[#allocation19_spill]] }
 0x8ef   : > { %s2791_s25 = sld [smem:[#allocation21_spill]] }
 0x8f0   :  { %1591 = vsyncpa [#allocation4], 1 }
 0x8f1   :  { %1593 = vsyncpa [#allocation4 + $0x1], 1 }
 0x8f2   :  { %1594 = vsyncpa [#allocation6], 1 }
 0x8f3   :  { %1596 = vsyncpa [#allocation6 + $0x1], 1 }

</bundles_post_ra>
